<compile_context>
chip_gen: v7x
topology: tpu7x:2x2x1
jax: 0.10.0
libtpu: 0.0.40
codegen_flags: <defaults>
</compile_context>

<pallas_src>
import jax
import jax.numpy as jnp
from jax.experimental import pallas as pl
from jax.experimental.pallas import tpu as pltpu

EPS = 1e-5  # F.layer_norm default eps


def _make_kernel(k, p, W, M, N):
    def kernel(x_ref, w_ref, b_ref, o_ref):
        # x_ref: (1, C_in, L)     H-padded, flattened input strip (compute dtype)
        # w_ref: (k*k, N, C_in)   per-tap lifted weights, n = o*G + g (compute dtype)
        # b_ref: (N, 1)           bias (f32)
        # o_ref: (1, N, M)        normalized + ReLU'd output (f32), M = H*W lanes
        xs = x_ref[0]            # (C_in, L)
        ws = w_ref[...]          # (k*k, N, C_in)

        # output-column index (mod W): masks wrap-around at the W boundaries
        col = jax.lax.broadcasted_iota(jnp.int32, (1, M), 1) % W

        acc = jnp.zeros((N, M), jnp.float32)
        for dj in range(k):                       # static, unrolled
            part = jnp.zeros((N, M), jnp.float32)
            for di in range(k):
                start = di * W + dj               # static lane offset
                x_t = xs[:, start:start + M]      # (C_in, M) shifted view
                w_t = ws[di * k + dj]             # (N, C_in)
                part = part + jnp.dot(
                    w_t, x_t, preferred_element_type=jnp.float32)
            valid = (col >= p - dj) & (col < W + p - dj)
            acc = acc + part * valid.astype(jnp.float32)

        y = acc + b_ref[...]                      # (N, M) + (N, 1)

        # single-pass layer-norm stats over all C_out*G*H*W elements (f32)
        cnt = float(N * M)
        s1 = jnp.sum(y)
        s2 = jnp.sum(y * y)
        mean = s1 / cnt
        var = s2 / cnt - mean * mean
        inv = jax.lax.rsqrt(var + EPS)
        o_ref[0] = jnp.maximum((y - mean) * inv, 0.0).astype(o_ref.dtype)

    return kernel


def lifting_conv_block(x, weight, bias, group_order=4,
                       compute_dtype=jnp.bfloat16):
    """x: (B, C_in, H, W) f32 -> (B, C_out, G, H, W) f32."""
    B, C_in, H, W = x.shape
    C_out, _, k, _ = weight.shape
    G = group_order
    p = k // 2
    N = C_out * G
    M = H * W
    L = (H + 2 * p) * W + 2 * p

    # ---- cheap XLA-side prep (no im2col, no big HBM intermediates) ----------
    # lifted weights, ordered n = o*G + g so the kernel output is reshape-only
    w_rot = jnp.stack(
        [jnp.rot90(weight, k=g, axes=(-2, -1)) for g in range(G)], axis=1
    )                                                    # (C_out, G, C_in, k, k)
    w_full = w_rot.reshape(N, C_in, k, k)
    w_taps = w_full.transpose(2, 3, 0, 1).reshape(k * k, N, C_in)  # t = di*k+dj
    b_full = jnp.repeat(bias, G).reshape(N, 1).astype(jnp.float32)

    # pad H by p rows, flatten spatial dims, pad the flat axis by p on each side
    # so the per-tap shift (di*W + dj) is a plain static slice inside the kernel
    xp = jnp.pad(x, ((0, 0), (0, 0), (p, p), (0, 0)))
    xf = jnp.pad(xp.reshape(B, C_in, (H + 2 * p) * W), ((0, 0), (0, 0), (p, p)))

    xf = xf.astype(compute_dtype)
    w_taps = w_taps.astype(compute_dtype)

    out = pl.pallas_call(
        _make_kernel(k, p, W, M, N),
        out_shape=jax.ShapeDtypeStruct((B, N, M), jnp.float32),
        grid=(B,),
        in_specs=[
            pl.BlockSpec((1, C_in, L), lambda b: (b, 0, 0)),
            pl.BlockSpec((k * k, N, C_in), lambda b: (0, 0, 0)),
            pl.BlockSpec((N, 1), lambda b: (0, 0)),
        ],
        out_specs=pl.BlockSpec((1, N, M), lambda b: (b, 0, 0)),
        compiler_params=pltpu.CompilerParams(dimension_semantics=("parallel",)),
    )(xf, w_taps, b_full)

    # lane-dense (B, C_out*G, H*W) -> (B, C_out, G, H, W): pure reshape, no transpose
    return out.reshape(B, C_out, G, H, W)


def _reference(x, weight, bias, group_order=4):
    """Pure-JAX reference of the forward pass."""
    k = weight.shape[-1]
    pad = k // 2
    outs = []
    for g in range(group_order):
        wg = jnp.rot90(weight, k=g, axes=(-2, -1))
        y = jax.lax.conv_general_dilated(
            x, wg, window_strides=(1, 1), padding=[(pad, pad), (pad, pad)],
            dimension_numbers=("NCHW", "OIHW", "NCHW"),
        )
        outs.append(y + bias[None, :, None, None])
    y = jnp.stack(outs, axis=2)  # (B, C_out, G, H, W)
    mean = y.mean(axis=(1, 2, 3, 4), keepdims=True)
    var = ((y - mean) ** 2).mean(axis=(1, 2, 3, 4), keepdims=True)
    y = (y - mean) / jnp.sqrt(var + EPS)
    return jnp.maximum(y, 0.0)


if __name__ == "__main__":
    B, C_in, C_out, H, W, k, G = 2, 4, 8, 16, 16, 3, 4

    key = jax.random.PRNGKey(0)
    kx, kw, kb = jax.random.split(key, 3)
    x = jax.random.normal(kx, (B, C_in, H, W), dtype=jnp.float32)
    fan_in = C_in * k * k
    weight = jax.random.normal(kw, (C_out, C_in, k, k), dtype=jnp.float32) / jnp.sqrt(fan_in)
    bias = 0.1 * jax.random.normal(kb, (C_out,), dtype=jnp.float32)

    ref = _reference(x, weight, bias, group_order=G)

    # f32 operands: strict check against the f32 reference
    out_f32 = jax.block_until_ready(
        lifting_conv_block(x, weight, bias, group_order=G,
                           compute_dtype=jnp.float32))
    assert out_f32.shape == (B, C_out, G, H, W), out_f32.shape
    err_f32 = float(jnp.max(jnp.abs(out_f32 - ref)))
    assert jnp.allclose(out_f32, ref, atol=1e-4, rtol=1e-4), err_f32

    # bf16 MXU operands (default fast path): f32 accumulation, looser tolerance
    out_bf16 = jax.block_until_ready(
        lifting_conv_block(x, weight, bias, group_order=G,
                           compute_dtype=jnp.bfloat16))
    err_bf16 = float(jnp.max(jnp.abs(out_bf16 - ref)))
    assert jnp.allclose(out_bf16, ref, atol=5e-2, rtol=5e-2), err_bf16

    print("KERNEL_OK")
</pallas_src>

<mosaic_0001>
module attributes {stable_mosaic.version = 11 : i64} {
  func.func @kernel(%arg0: i32, %arg1: memref<1x4x290xf32, #tpu.memory_space<vmem>>, %arg2: memref<9x32x4xf32, #tpu.memory_space<vmem>>, %arg3: memref<32x1xf32, #tpu.memory_space<vmem>>, %arg4: memref<1x32x256xf32, #tpu.memory_space<vmem>>) attributes {dimension_semantics = [#tpu.dimension_semantics<parallel>], iteration_bounds = array<i64: 2>, scalar_prefetch = 0 : i64, scratch_operands = 0 : i64, tpu.core_type = #tpu.core_type<tc>, window_params = [{transform_indices = @transform_0, window_bounds = array<i64: 1, 4, 290>}, {pipeline_mode = #tpu.pipeline_mode<synchronous>, transform_indices = @transform_1, window_bounds = array<i64: 9, 32, 4>}, {pipeline_mode = #tpu.pipeline_mode<synchronous>, transform_indices = @transform_2, window_bounds = array<i64: 32, 1>}, {transform_indices = @transform_3, window_bounds = array<i64: 1, 32, 256>}]} {
    %c0 = arith.constant 0 : index
    %c0_0 = arith.constant 0 : index
    %c0_1 = arith.constant 0 : index
    %0 = vector.load %arg1[%c0, %c0_0, %c0_1] : memref<1x4x290xf32, #tpu.memory_space<vmem>>, vector<1x4x290xf32>
    %1 = vector.shape_cast %0 : vector<1x4x290xf32> to vector<4x290xf32>
    %c0_2 = arith.constant 0 : index
    %c0_3 = arith.constant 0 : index
    %c0_4 = arith.constant 0 : index
    %2 = vector.load %arg2[%c0_2, %c0_3, %c0_4] : memref<9x32x4xf32, #tpu.memory_space<vmem>>, vector<9x32x4xf32>
    %3 = tpu.iota {dimensions = array<i32: 1>} : vector<1x256xi32>
    %c16_i32 = arith.constant 16 : i32
    %c0_i32 = arith.constant 0 : i32
    %4 = arith.cmpi eq, %c16_i32, %c0_i32 : i32
    %c1_i32 = arith.constant 1 : i32
    %5 = arith.select %4, %c1_i32, %c16_i32 : i32
    %6 = vector.broadcast %5 : i32 to vector<1x256xi32>
    %7 = arith.remsi %3, %6 : vector<1x256xi32>
    %c0_i32_5 = arith.constant 0 : i32
    %8 = vector.broadcast %c0_i32_5 : i32 to vector<1x256xi32>
    %9 = arith.cmpi ne, %7, %8 : vector<1x256xi32>
    %c0_i32_6 = arith.constant 0 : i32
    %10 = vector.broadcast %c0_i32_6 : i32 to vector<1x256xi32>
    %11 = arith.cmpi slt, %7, %10 : vector<1x256xi32>
    %c0_i32_7 = arith.constant 0 : i32
    %12 = arith.cmpi slt, %5, %c0_i32_7 : i32
    %13 = vector.broadcast %12 : i1 to vector<1x256xi1>
    %14 = vector.broadcast %13 : vector<1x256xi1> to vector<1x256xi1>
    %15 = arith.xori %11, %14 : vector<1x256xi1>
    %16 = arith.andi %15, %9 : vector<1x256xi1>
    %17 = vector.broadcast %5 : i32 to vector<1x256xi32>
    %18 = arith.addi %7, %17 : vector<1x256xi32>
    %19 = arith.select %16, %18, %7 : vector<1x256xi1>, vector<1x256xi32>
    %cst = arith.constant 0.000000e+00 : f32
    %20 = vector.broadcast %cst : f32 to vector<32x256xf32>
    %cst_8 = arith.constant 0.000000e+00 : f32
    %21 = vector.broadcast %cst_8 : f32 to vector<32x256xf32>
    %22 = vector.extract_strided_slice %1 {offsets = [0, 0], sizes = [4, 256], strides = [1, 1]} : vector<4x290xf32> to vector<4x256xf32>
    %23 = vector.extract_strided_slice %2 {offsets = [0, 0, 0], sizes = [1, 32, 4], strides = [1, 1, 1]} : vector<9x32x4xf32> to vector<1x32x4xf32>
    %24 = vector.shape_cast %23 : vector<1x32x4xf32> to vector<32x4xf32>
    %cst_9 = arith.constant dense<0.000000e+00> : vector<32x256xf32>
    %25 = tpu.matmul %24, %22, %cst_9 {dimension_numbers = #tpu.dot_dimension_numbers<[1], [0], [0], [1], [0, 0, 1, 1], [], []>} : vector<32x4xf32>, vector<4x256xf32>, vector<32x256xf32> -> vector<32x256xf32>
    %26 = arith.addf %21, %25 : vector<32x256xf32>
    %27 = vector.extract_strided_slice %1 {offsets = [0, 16], sizes = [4, 256], strides = [1, 1]} : vector<4x290xf32> to vector<4x256xf32>
    %28 = vector.extract_strided_slice %2 {offsets = [3, 0, 0], sizes = [1, 32, 4], strides = [1, 1, 1]} : vector<9x32x4xf32> to vector<1x32x4xf32>
    %29 = vector.shape_cast %28 : vector<1x32x4xf32> to vector<32x4xf32>
    %cst_10 = arith.constant dense<0.000000e+00> : vector<32x256xf32>
    %30 = tpu.matmul %29, %27, %cst_10 {dimension_numbers = #tpu.dot_dimension_numbers<[1], [0], [0], [1], [0, 0, 1, 1], [], []>} : vector<32x4xf32>, vector<4x256xf32>, vector<32x256xf32> -> vector<32x256xf32>
    %31 = arith.addf %26, %30 : vector<32x256xf32>
    %32 = vector.extract_strided_slice %1 {offsets = [0, 32], sizes = [4, 256], strides = [1, 1]} : vector<4x290xf32> to vector<4x256xf32>
    %33 = vector.extract_strided_slice %2 {offsets = [6, 0, 0], sizes = [1, 32, 4], strides = [1, 1, 1]} : vector<9x32x4xf32> to vector<1x32x4xf32>
    %34 = vector.shape_cast %33 : vector<1x32x4xf32> to vector<32x4xf32>
    %cst_11 = arith.constant dense<0.000000e+00> : vector<32x256xf32>
    %35 = tpu.matmul %34, %32, %cst_11 {dimension_numbers = #tpu.dot_dimension_numbers<[1], [0], [0], [1], [0, 0, 1, 1], [], []>} : vector<32x4xf32>, vector<4x256xf32>, vector<32x256xf32> -> vector<32x256xf32>
    %36 = arith.addf %31, %35 : vector<32x256xf32>
    %c1_i32_12 = arith.constant 1 : i32
    %37 = vector.broadcast %c1_i32_12 : i32 to vector<1x256xi32>
    %38 = arith.cmpi sge, %19, %37 : vector<1x256xi32>
    %c17_i32 = arith.constant 17 : i32
    %39 = vector.broadcast %c17_i32 : i32 to vector<1x256xi32>
    %40 = arith.cmpi slt, %19, %39 : vector<1x256xi32>
    %41 = arith.andi %38, %40 : vector<1x256xi1>
    %42 = arith.extui %41 : vector<1x256xi1> to vector<1x256xi32>
    %43 = arith.sitofp %42 : vector<1x256xi32> to vector<1x256xf32>
    %44 = vector.broadcast %43 : vector<1x256xf32> to vector<32x256xf32>
    %45 = arith.mulf %36, %44 : vector<32x256xf32>
    %46 = arith.addf %20, %45 : vector<32x256xf32>
    %cst_13 = arith.constant 0.000000e+00 : f32
    %47 = vector.broadcast %cst_13 : f32 to vector<32x256xf32>
    %48 = vector.extract_strided_slice %1 {offsets = [0, 1], sizes = [4, 256], strides = [1, 1]} : vector<4x290xf32> to vector<4x256xf32>
    %49 = vector.extract_strided_slice %2 {offsets = [1, 0, 0], sizes = [1, 32, 4], strides = [1, 1, 1]} : vector<9x32x4xf32> to vector<1x32x4xf32>
    %50 = vector.shape_cast %49 : vector<1x32x4xf32> to vector<32x4xf32>
    %cst_14 = arith.constant dense<0.000000e+00> : vector<32x256xf32>
    %51 = tpu.matmul %50, %48, %cst_14 {dimension_numbers = #tpu.dot_dimension_numbers<[1], [0], [0], [1], [0, 0, 1, 1], [], []>} : vector<32x4xf32>, vector<4x256xf32>, vector<32x256xf32> -> vector<32x256xf32>
    %52 = arith.addf %47, %51 : vector<32x256xf32>
    %53 = vector.extract_strided_slice %1 {offsets = [0, 17], sizes = [4, 256], strides = [1, 1]} : vector<4x290xf32> to vector<4x256xf32>
    %54 = vector.extract_strided_slice %2 {offsets = [4, 0, 0], sizes = [1, 32, 4], strides = [1, 1, 1]} : vector<9x32x4xf32> to vector<1x32x4xf32>
    %55 = vector.shape_cast %54 : vector<1x32x4xf32> to vector<32x4xf32>
    %cst_15 = arith.constant dense<0.000000e+00> : vector<32x256xf32>
    %56 = tpu.matmul %55, %53, %cst_15 {dimension_numbers = #tpu.dot_dimension_numbers<[1], [0], [0], [1], [0, 0, 1, 1], [], []>} : vector<32x4xf32>, vector<4x256xf32>, vector<32x256xf32> -> vector<32x256xf32>
    %57 = arith.addf %52, %56 : vector<32x256xf32>
    %58 = vector.extract_strided_slice %1 {offsets = [0, 33], sizes = [4, 256], strides = [1, 1]} : vector<4x290xf32> to vector<4x256xf32>
    %59 = vector.extract_strided_slice %2 {offsets = [7, 0, 0], sizes = [1, 32, 4], strides = [1, 1, 1]} : vector<9x32x4xf32> to vector<1x32x4xf32>
    %60 = vector.shape_cast %59 : vector<1x32x4xf32> to vector<32x4xf32>
    %cst_16 = arith.constant dense<0.000000e+00> : vector<32x256xf32>
    %61 = tpu.matmul %60, %58, %cst_16 {dimension_numbers = #tpu.dot_dimension_numbers<[1], [0], [0], [1], [0, 0, 1, 1], [], []>} : vector<32x4xf32>, vector<4x256xf32>, vector<32x256xf32> -> vector<32x256xf32>
    %62 = arith.addf %57, %61 : vector<32x256xf32>
    %c0_i32_17 = arith.constant 0 : i32
    %63 = vector.broadcast %c0_i32_17 : i32 to vector<1x256xi32>
    %64 = arith.cmpi sge, %19, %63 : vector<1x256xi32>
    %c16_i32_18 = arith.constant 16 : i32
    %65 = vector.broadcast %c16_i32_18 : i32 to vector<1x256xi32>
    %66 = arith.cmpi slt, %19, %65 : vector<1x256xi32>
    %67 = arith.andi %64, %66 : vector<1x256xi1>
    %68 = arith.extui %67 : vector<1x256xi1> to vector<1x256xi32>
    %69 = arith.sitofp %68 : vector<1x256xi32> to vector<1x256xf32>
    %70 = vector.broadcast %69 : vector<1x256xf32> to vector<32x256xf32>
    %71 = arith.mulf %62, %70 : vector<32x256xf32>
    %72 = arith.addf %46, %71 : vector<32x256xf32>
    %cst_19 = arith.constant 0.000000e+00 : f32
    %73 = vector.broadcast %cst_19 : f32 to vector<32x256xf32>
    %74 = vector.extract_strided_slice %1 {offsets = [0, 2], sizes = [4, 256], strides = [1, 1]} : vector<4x290xf32> to vector<4x256xf32>
    %75 = vector.extract_strided_slice %2 {offsets = [2, 0, 0], sizes = [1, 32, 4], strides = [1, 1, 1]} : vector<9x32x4xf32> to vector<1x32x4xf32>
    %76 = vector.shape_cast %75 : vector<1x32x4xf32> to vector<32x4xf32>
    %cst_20 = arith.constant dense<0.000000e+00> : vector<32x256xf32>
    %77 = tpu.matmul %76, %74, %cst_20 {dimension_numbers = #tpu.dot_dimension_numbers<[1], [0], [0], [1], [0, 0, 1, 1], [], []>} : vector<32x4xf32>, vector<4x256xf32>, vector<32x256xf32> -> vector<32x256xf32>
    %78 = arith.addf %73, %77 : vector<32x256xf32>
    %79 = vector.extract_strided_slice %1 {offsets = [0, 18], sizes = [4, 256], strides = [1, 1]} : vector<4x290xf32> to vector<4x256xf32>
    %80 = vector.extract_strided_slice %2 {offsets = [5, 0, 0], sizes = [1, 32, 4], strides = [1, 1, 1]} : vector<9x32x4xf32> to vector<1x32x4xf32>
    %81 = vector.shape_cast %80 : vector<1x32x4xf32> to vector<32x4xf32>
    %cst_21 = arith.constant dense<0.000000e+00> : vector<32x256xf32>
    %82 = tpu.matmul %81, %79, %cst_21 {dimension_numbers = #tpu.dot_dimension_numbers<[1], [0], [0], [1], [0, 0, 1, 1], [], []>} : vector<32x4xf32>, vector<4x256xf32>, vector<32x256xf32> -> vector<32x256xf32>
    %83 = arith.addf %78, %82 : vector<32x256xf32>
    %84 = vector.extract_strided_slice %1 {offsets = [0, 34], sizes = [4, 256], strides = [1, 1]} : vector<4x290xf32> to vector<4x256xf32>
    %85 = vector.extract_strided_slice %2 {offsets = [8, 0, 0], sizes = [1, 32, 4], strides = [1, 1, 1]} : vector<9x32x4xf32> to vector<1x32x4xf32>
    %86 = vector.shape_cast %85 : vector<1x32x4xf32> to vector<32x4xf32>
    %cst_22 = arith.constant dense<0.000000e+00> : vector<32x256xf32>
    %87 = tpu.matmul %86, %84, %cst_22 {dimension_numbers = #tpu.dot_dimension_numbers<[1], [0], [0], [1], [0, 0, 1, 1], [], []>} : vector<32x4xf32>, vector<4x256xf32>, vector<32x256xf32> -> vector<32x256xf32>
    %88 = arith.addf %83, %87 : vector<32x256xf32>
    %c-1_i32 = arith.constant -1 : i32
    %89 = vector.broadcast %c-1_i32 : i32 to vector<1x256xi32>
    %90 = arith.cmpi sge, %19, %89 : vector<1x256xi32>
    %c15_i32 = arith.constant 15 : i32
    %91 = vector.broadcast %c15_i32 : i32 to vector<1x256xi32>
    %92 = arith.cmpi slt, %19, %91 : vector<1x256xi32>
    %93 = arith.andi %90, %92 : vector<1x256xi1>
    %94 = arith.extui %93 : vector<1x256xi1> to vector<1x256xi32>
    %95 = arith.sitofp %94 : vector<1x256xi32> to vector<1x256xf32>
    %96 = vector.broadcast %95 : vector<1x256xf32> to vector<32x256xf32>
    %97 = arith.mulf %88, %96 : vector<32x256xf32>
    %98 = arith.addf %72, %97 : vector<32x256xf32>
    %c0_23 = arith.constant 0 : index
    %c0_24 = arith.constant 0 : index
    %99 = vector.load %arg3[%c0_23, %c0_24] : memref<32x1xf32, #tpu.memory_space<vmem>>, vector<32x1xf32>
    %100 = vector.broadcast %99 : vector<32x1xf32> to vector<32x256xf32>
    %101 = arith.addf %98, %100 : vector<32x256xf32>
    %102 = vector.shape_cast %101 : vector<32x256xf32> to vector<1x32x256xf32>
    %cst_25 = arith.constant dense<0.000000e+00> : vector<1xf32>
    %103 = vector.multi_reduction <add>, %102, %cst_25 [1, 2] : vector<1x32x256xf32> to vector<1xf32>
    %104 = vector.shape_cast %103 : vector<1xf32> to vector<1x1x1xf32>
    %105 = vector.extract %104[0, 0, 0] : f32 from vector<1x1x1xf32>
    %106 = arith.mulf %101, %101 : vector<32x256xf32>
    %107 = vector.shape_cast %106 : vector<32x256xf32> to vector<1x32x256xf32>
    %cst_26 = arith.constant dense<0.000000e+00> : vector<1xf32>
    %108 = vector.multi_reduction <add>, %107, %cst_26 [1, 2] : vector<1x32x256xf32> to vector<1xf32>
    %109 = vector.shape_cast %108 : vector<1xf32> to vector<1x1x1xf32>
    %110 = vector.extract %109[0, 0, 0] : f32 from vector<1x1x1xf32>
    %cst_27 = arith.constant 8.192000e+03 : f32
    %111 = arith.divf %105, %cst_27 : f32
    %cst_28 = arith.constant 8.192000e+03 : f32
    %112 = arith.divf %110, %cst_28 : f32
    %113 = arith.mulf %111, %111 : f32
    %114 = arith.subf %112, %113 : f32
    %cst_29 = arith.constant 9.99999974E-6 : f32
    %115 = arith.addf %114, %cst_29 : f32
    %116 = math.rsqrt %115 : f32
    %117 = vector.broadcast %111 : f32 to vector<32x256xf32>
    %118 = arith.subf %101, %117 : vector<32x256xf32>
    %119 = vector.broadcast %116 : f32 to vector<32x256xf32>
    %120 = arith.mulf %118, %119 : vector<32x256xf32>
    %cst_30 = arith.constant 0.000000e+00 : f32
    %121 = vector.broadcast %cst_30 : f32 to vector<32x256xf32>
    %122 = arith.maximumf %120, %121 : vector<32x256xf32>
    %c0_31 = arith.constant 0 : index
    %c0_32 = arith.constant 0 : index
    %c0_33 = arith.constant 0 : index
    %123 = vector.load %arg4[%c0_31, %c0_32, %c0_33] : memref<1x32x256xf32, #tpu.memory_space<vmem>>, vector<1x32x256xf32>
    %124 = vector.shape_cast %123 : vector<1x32x256xf32> to vector<32x256xf32>
    %125 = vector.shape_cast %122 : vector<32x256xf32> to vector<1x32x256xf32>
    tpu.vector_store %arg4[%c0_31, %c0_32, %c0_33], %125 {strides = array<i32>} : memref<1x32x256xf32, #tpu.memory_space<vmem>>, vector<1x32x256xf32>,
    return
  }
  func.func @transform_0(%arg0: i32) -> (i32, i32, i32) {
    %c0_i32 = arith.constant 0 : i32
    %c0_i32_0 = arith.constant 0 : i32
    %c0_i32_1 = arith.constant 0 : i32
    return %arg0, %c0_i32, %c0_i32_0 : i32, i32, i32
  }
  func.func @transform_1(%arg0: i32) -> (i32, i32, i32) {
    %c0_i32 = arith.constant 0 : i32
    %c0_i32_0 = arith.constant 0 : i32
    %c0_i32_1 = arith.constant 0 : i32
    %c0_i32_2 = arith.constant 0 : i32
    return %c0_i32, %c0_i32_0, %c0_i32_1 : i32, i32, i32
  }
  func.func @transform_2(%arg0: i32) -> (i32, i32) {
    %c0_i32 = arith.constant 0 : i32
    %c0_i32_0 = arith.constant 0 : i32
    %c0_i32_1 = arith.constant 0 : i32
    return %c0_i32, %c0_i32_0 : i32, i32
  }
  func.func @transform_3(%arg0: i32) -> (i32, i32, i32) {
    %c0_i32 = arith.constant 0 : i32
    %c0_i32_0 = arith.constant 0 : i32
    %c0_i32_1 = arith.constant 0 : i32
    return %arg0, %c0_i32, %c0_i32_0 : i32, i32, i32
  }
}

</mosaic_0001>

<bundles_post_ra>
// kernel: tpu_custom_call.1
= control target key start
LH: loop header
LB: loop body
LE: loop exit
PB: predicated region body
PF: predicated region fallthrough
CT: control target
= control target key end

     0   :  { %8 = vsyncpa [#allocation3], 0  ;;  %s2235_s0 = inlined_call_operand.vmem [shape: f32[2,4,290], index: 0, kind: input, shape index: {}]   ;;  %s2236_s1 = inlined_call_operand.vmem [shape: f32[9,32,4], index: 1, kind: input, shape index: {}]   ;;  %s2237_s2 = inlined_call_operand.vmem [shape: f32[32,1], index: 2, kind: input, shape index: {}]   ;;  %s2238_s3 = inlined_call_operand.hbm [shape: f32[2,32,256], index: 3, kind: output, shape index: {}]  }
   0x1   :  { %10 = vsyncpa [#allocation3 + $0x1], 0  ;;  %s1832_s12 = smov 0   ;;  %s1834_s13 = smov 0  }
   0x2   :  { %s1836_s14 = smov 0   ;;  %s1838_s15 = smov 0  }
   0x3 LB: > { %s1853_s16 = sadd.s32 4294967295, %s1797_s15   ;;  %s1552_s17 = sadd.s32 4294967294, %s1797_s15   ;;  %s1797_s15 = sphi %s1838_s15, %s2244_s15   ;;  %s1793_s14 = sphi %s1836_s14, %s2243_s14   ;;  %s1789_s13 = sphi %s1834_s13, %s2242_s13   ;;  %s1785_s12 = sphi %s1832_s12, %s2241_s12  }
   0x4   : > { %s1857_s18 = sadd.s32 1, %s1797_s15   ;;  %s91_s19 = sadd.s32 1, %s1793_s14 }
   0x5   : > { %s88_s20 = ssub.s32 %s1797_s15, %s1857_s18  ;;  %p101_p0 = scmp.ne.s32.totalorder %s1793_s14, %s1789_s13 }
   0x6   : > { %p89_p1 = scmp.eq.s32.totalorder %s88_s20, 0  ;;  %p102_p2 = scmp.eq.s32.totalorder %s1853_s16, 1 }
   0x7   : > { %p107_p3 = scmp.ne.s32.totalorder %s1789_s13, %s1785_s12  ;;  %p108_p4 = scmp.eq.s32.totalorder %s1552_s17, 1 }
   0x8   : > { %s1868_s21 = scalar_select %p89_p1, %s1793_s14, %s91_s19  }
   0x9   : > { %p1870_p5 = por %p102_p2, %p101_p0  ;;  %p1874_p6 = por %p108_p4, %p107_p3 }
   0xa   : > { %p1555_p7 = scmp.ge.s32.totalorder %s1797_s15, 1  ;;  %p140_p8 = scmp.lt.s32.totalorder %s1797_s15, 3 }
   0xc   : > { %p141_p9 = pnand %p1555_p7, %p140_p8 }
   0xd   : > { %p164_p10 = scmp.lt.s32.totalorder (!%p141_p9), %s1853_s16, 1  ;;  %v1799_v0 = vmov (!%p141_p9), 0.0   ;;  %vm259_vm0 = vcmask (!%p141_p9), 1043456   ;;  %s1800_s29 = smov (!%p141_p9), 112   ;;  %v171_v3 = vld [vmem:[%s2236_s1] sm:$0xff] (!%p141_p9)  ;;  %vm246_vm1 = vcmask (!%p141_p9), 31744  }
   0xe   : > { %144 = sbr.rel (%p141_p9) target bundleno = 739 (0x2e3), region = 32  ;;  %433 = vmatprep.mubr.f32.mxu0 (!%p141_p9), %v1799_v0  ;;  %328 = vmatprep.mubr.f32.mxu1 (!%p141_p9), %v1799_v0  ;;  %s1801_s5 = smov (!%p141_p9), 96   ;;  %v172_v5 = vld [vmem:[%s2236_s1 + $0x8] sm:$0xff] (!%p141_p9)  ;;  %v1358_v6 = vld [vmem:[%s2237_s2] sm:$0xff] (!%p141_p9)  ;;  %v1808_v8 = vmov (!%p141_p9), 0   ;;  %v1361_v9 = vld [vmem:[%s2237_s2 + $0x18] sm:$0xff] (!%p141_p9) }
   0xf   : > { %s1802_s8 = smov (!%p141_p9), 111   ;;  %s1803_s9 = smov (!%p141_p9), 110   ;;  %v1359_v7 = vld [vmem:[%s2237_s2 + $0x8] sm:$0xff] (!%p141_p9)  ;;  %1730 = vset.pattern.permute.xlu0 (!%p141_p9), %v1808_v8  ;;  %1731 = vset.pattern.permute.xlu1 (!%p141_p9), %v1808_v8  ;;  %v1360_v10 = vld [vmem:[%s2237_s2 + $0x10] sm:$0xff] (!%p141_p9)  ;;  %vm243_vm2 = vcmask (!%p141_p9), 916480   ;;  %vm464_vm3 = vcmask (!%p141_p9), 785408  }
  0x10   : > { %s1804_s10 = smov (!%p141_p9), 127   ;;  %s1805_s11 = smov (!%p141_p9), 126   ;;  %v183_v16 = vld [vmem:[%s2236_s1 + $0x60] sm:$0xff] (!%p141_p9)  ;;  %v184_v22 = vld [vmem:[%s2236_s1 + $0x68] sm:$0xff] (!%p141_p9)  ;;  %vm612_vm4 = vcmask (!%p141_p9), 908288   ;;  %v185_v27 = vld [vmem:[%s2236_s1 + $0x70] sm:$0xff] (!%p141_p9) }
  0x11   : > { %s1806_s17 = smov (!%p141_p9), 95   ;;  %s1807_s19 = smov (!%p141_p9), 94   ;;  %v195_v23 = vld [vmem:[%s2236_s1 + $0xc0] sm:$0xff] (!%p141_p9)  ;;  %v196_v28 = vld [vmem:[%s2236_s1 + $0xc8] sm:$0xff] (!%p141_p9)  ;;  %vm988_vm5 = vcmask (!%p141_p9), 900096   ;;  %v186_v32 = vld [vmem:[%s2236_s1 + $0x78] sm:$0xff] (!%p141_p9) }
  0x12   : > { %v197_v33 = vld [vmem:[%s2236_s1 + $0xd0] sm:$0xff] (!%p141_p9)  ;;  %v198_v38 = vld [vmem:[%s2236_s1 + $0xd8] sm:$0xff] (!%p141_p9)  ;;  %vm726_vm6 = vcmask (!%p141_p9), 1039360   ;;  %v191_v44 = vld [vmem:[%s2236_s1 + $0xa0] sm:$0xff] (!%p141_p9)  ;;  %vm1102_vm7 = vcmask (!%p141_p9), 1031168   ;;  %vm840_vm8 = vcmask (!%p141_p9), 777216  }
  0x13   : > { %v173_v37 = vld [vmem:[%s2236_s1 + $0x10] sm:$0xff] (!%p141_p9)  ;;  %v174_v43 = vld [vmem:[%s2236_s1 + $0x18] sm:$0xff] (!%p141_p9)  ;;  %v187_v48 = vld [vmem:[%s2236_s1 + $0x80] sm:$0xff] (!%p141_p9)  ;;  %vm1216_vm9 = vcmask (!%p141_p9), 769024   ;;  %s161_s7 = sand.u32 (!%p141_p9), 1, %s1789_s13   ;;  %s1809_s26 = smov (!%p141_p9), [#allocation2]  }
  0x14   : > { %v192_v49 = vld [vmem:[%s2236_s1 + $0xa8] sm:$0xff] (!%p141_p9)  ;;  %v193_v55 = vld [vmem:[%s2236_s1 + $0xb0] sm:$0xff] (!%p141_p9)  ;;  %v194_v60 = vld [vmem:[%s2236_s1 + $0xb8] sm:$0xff] (!%p141_p9) }
  0x15   : > { %s165_s24 = scalar_select %p164_p10, %s1853_s16, 1  ;;  %v188_v54 = vld [vmem:[%s2236_s1 + $0x88] sm:$0xff]  ;;  %v189_v59 = vld [vmem:[%s2236_s1 + $0x90] sm:$0xff] }
  0x17   : > { %s1672_s25 = smul.u32 12, %s165_s24 }
  0x19   : > { %s168_s28 = scalar_lea.vmem %s2235_s0, %s1672_s25 }
  0x1a   : > { %v1887_v1 = vld [vmem:[%s168_s28] sm:$0xff]  ;;  %v170_v4 = vld [vmem:[%s168_s28 + $0x8] sm:$0xf] }
  0x1b   : > { %237 = vrot.lane.b32.xlu1 %v1887_v1, %s1800_s29  ;;  %v1892_v2 = vcombine.high %v1887_v1, %v1887_v1 }
  0x1d   : > { %239 = vrot.lane.b32.xlu0 %v1892_v2, %s1800_s29  ;;  %1564 = vmatprep.subr.msk.mxu0 %vm259_vm0, %v1892_v2 }
  0x1e   : > { %1565 = vmatpush1.msk.msra.mxu0 %vm259_vm0, %v1887_v1 }
  0x1f   : > { %460 = vrot.lane.b32.xlu1 %v1892_v2, %s1801_s5  ;;  %1566 = vmatmul.mubr.msk.f32.vlgmr.msra.gmra.mrb[0].mxu0 %vm246_vm1, %v171_v3 }
  0x20   : > { %439 = vmatprep.mubr.f32.mxu0 %v1799_v0 }
  0x21   : > { %241 = vrot.lane.b32.xlu0 %v170_v4, %s1800_s29 }
  0x23   : > { %458 = vrot.lane.b32.xlu1 %v1887_v1, %s1801_s5  ;;  %1567 = vmatmul.mubr.msk.f32.gmra.mrb[2].mxu0 %vm246_vm1, %v172_v5 }
  0x24   : > { %547 = vmatprep.mubr.f32.mxu0 %v1799_v0 }
  0x25   : > { %462 = vrot.lane.b32.xlu0 %v170_v4, %s1801_s5 }
  0x27   : > { %610 = vrot.lane.b32.xlu1 %v170_v4, %s1802_s8 }
  0x29   : > { %608 = vrot.lane.b32.xlu0 %v1892_v2, %s1802_s8 }
  0x2b   : > { %986 = vrot.lane.b32.xlu1 %v170_v4, %s1803_s9 }
  0x2d   : > { %984 = vrot.lane.b32.xlu0 %v1892_v2, %s1803_s9 }
  0x2f   : > { %982 = vrot.lane.b32.xlu1 %v1887_v1, %s1803_s9 }
  0x31   : > { %606 = vrot.lane.b32.xlu0 %v1887_v1, %s1802_s8  ;;  %s1556_s8 = sshll.u32 %s161_s7, 6 }
  0x33   : > { %724 = vrot.lane.b32.xlu1 %v170_v4, %s1804_s10 }
  0x35   : > { %722 = vrot.lane.b32.xlu0 %v1892_v2, %s1804_s10 }
  0x37   : > { %1100 = vrot.lane.b32.xlu1 %v170_v4, %s1805_s11 }
  0x39   : > { %1098 = vrot.lane.b32.xlu0 %v1892_v2, %s1805_s11 }
  0x3b   : > { %1096 = vrot.lane.b32.xlu1 %v1887_v1, %s1805_s11  ;;  %s163_s11 = scalar_lea.vmem [#allocation2], %s1556_s8 }
  0x3d   : > { %720 = vrot.lane.b32.xlu0 %v1887_v1, %s1804_s10  ;;  %s1621_s10 = sshll.u32 %s1853_s16, 10  ;;  %s2194_s16 = scalar_lea.sflag [#allocation3], %s161_s7 }
  0x3e   : > { %s2188_s24 = scalar_lea.hbm %s2238_s3, %s1621_s10 }
  0x3f   : > { %838 = vrot.lane.b32.xlu1 %v170_v4, %s1806_s17 }
  0x41   : > { %836 = vrot.lane.b32.xlu0 %v1892_v2, %s1806_s17 }
  0x43   : > { %1214 = vrot.lane.b32.xlu1 %v170_v4, %s1807_s19 }
  0x45   : > { %1212 = vrot.lane.b32.xlu0 %v1892_v2, %s1807_s19 }
  0x47   : > { %1210 = vrot.lane.b32.xlu1 %v1887_v1, %s1807_s19 }
  0x49   : > { %834 = vrot.lane.b32.xlu0 %v1887_v1, %s1806_s17  ;;  %s1490_s17 = sshll.u32 %s163_s11, 4  ;;  %s2190_s17 = int_to_ptr.vmem [resolvable:$true] %s1490_s17 }
  0x4a   : > { %s1735_s25 = scalar_lea.vmem %s2190_s17, 1024 }
  0x4b   : > { %1369 = vperm.xlu1 %1731, %v1359_v7   ;;  %v180_v7 = vld [vmem:[%s2236_s1 + $0x48] sm:$0xff]  ;;  %p1736_p11 = scmp.ne.s32.totalorder %s2190_s17, %s1735_s25 }
  0x4d   : > { %1364 = vperm.xlu0 %1730, %v1358_v6   ;;  %v175_v6 = vld [vmem:[%s2236_s1 + $0x20] sm:$0xff]  ;;  %p1737_p12 = pnand %p1736_p11, %p1870_p5 }
  0x4f   : > { %1374 = vperm.xlu1 %1731, %v1360_v10   ;;  %v181_v10 = vld [vmem:[%s2236_s1 + $0x50] sm:$0xff]  ;;  %p1738_p13 = pneg %p1737_p12 }
  0x51   : > { %1379 = vperm.xlu0 %1730, %v1361_v9   ;;  %v176_v9 = vld [vmem:[%s2236_s1 + $0x28] sm:$0xff] }
  0x8d   : > { %v238_v11 = vpop.permute.xlu1 %237 }
  0x8f   : > { %v240_v12 = vpop.permute.xlu0 %239 }
  0x90   : > { %v244_v18 = vsel %vm243_vm2, %v238_v11, %v240_v12  ;;  %v177_v11 = vld [vmem:[%s2236_s1 + $0x30] sm:$0xff] }
  0x91   : > { %v461_v13 = vpop.permute.xlu1 %460 }
  0x93   : > { %v242_v14 = vpop.permute.xlu0 %241 }
  0x94   : > { %v245_v15 = vsel %vm243_vm2, %v240_v12, %v242_v14  ;;  %v182_v12 = vld [vmem:[%s2236_s1 + $0x58] sm:$0xff]  ;;  %v203_v14 = vld [vmem:[%s2236_s1 + $0x100] sm:$0xff] }
  0x95   : > { %v459_v17 = vpop.permute.xlu1 %458  ;;  %1558 = vmatprep.subr.msk.mxu1 %vm259_vm0, %v245_v15  ;;  %v199_v15 = vld [vmem:[%s2236_s1 + $0xe0] sm:$0xff] }
  0x96   : > { %1559 = vmatpush1.msk.msra.mxu1 %vm259_vm0, %v244_v18  ;;  %v465_v19 = vsel %vm464_vm3, %v459_v17, %v461_v13  ;;  %v200_v17 = vld [vmem:[%s2236_s1 + $0xe8] sm:$0xff]  ;;  %v205_v18 = vld [vmem:[%s2236_s1 + $0x110] sm:$0xff] }
  0x97   : > { %1560 = vmatmul.mubr.msk.f32.vlgmr.msra.gmra.mrb[0].mxu1 %vm246_vm1, %v183_v16  ;;  %v463_v20 = vpop.permute.xlu0 %462  ;;  %1622 = vmatprep.subr.msk.mxu1 %vm259_vm0, %v1892_v2  ;;  %v179_v2 = vld [vmem:[%s2236_s1 + $0x40] sm:$0xff]  ;;  %v204_v16 = vld [vmem:[%s2236_s1 + $0x108] sm:$0xff] }
  0x98   : > { %v466_v21 = vsel %vm464_vm3, %v461_v13, %v463_v20  ;;  %334 = vmatprep.mubr.f32.mxu1 %v1799_v0  ;;  %1623 = vmatpush1.msk.msra.mxu1 %vm259_vm0, %v1887_v1  ;;  %v190_v1 = vld [vmem:[%s2236_s1 + $0x98] sm:$0xff] }
  0x99   : > { %v611_v24 = vpop.permute.xlu1 %610  ;;  %1570 = vmatprep.subr.msk.mxu0 %vm259_vm0, %v466_v21  ;;  %v178_v13 = vld [vmem:[%s2236_s1 + $0x38] sm:$0xff] }
  0x9a   : > { %1571 = vmatpush1.msk.msra.mxu0 %vm259_vm0, %v465_v19  ;;  %v201_v19 = vld [vmem:[%s2236_s1 + $0xf0] sm:$0xff]  ;;  %v206_v20 = vld [vmem:[%s2236_s1 + $0x118] sm:$0xff] }
  0x9b   : > { %1561 = vmatmul.mubr.msk.f32.gmra.mrb[2].mxu1 %vm246_vm1, %v184_v22  ;;  %v609_v25 = vpop.permute.xlu0 %608  ;;  %1572 = vmatmul.mubr.msk.f32.vlgmr.msra.gmra.mrb[0].mxu0 %vm246_vm1, %v195_v23  ;;  %v202_v21 = vld [vmem:[%s2236_s1 + $0xf8] sm:$0xff] }
  0x9c   : > { %v614_v26 = vsel %vm612_vm4, %v609_v25, %v611_v24  ;;  %340 = vmatprep.mubr.f32.mxu1 %v1799_v0  ;;  %553 = vmatprep.mubr.f32.mxu0 %v1799_v0 }
  0x9d   : > { %v987_v29 = vpop.permute.xlu1 %986  ;;  %1578 = vmatprep.subr.msk.mxu1 %vm259_vm0, %v614_v26 }
  0x9f   : > { %1562 = vmatmul.mubr.msk.f32.gmra.mrb[4].mxu1 %vm246_vm1, %v185_v27  ;;  %v985_v30 = vpop.permute.xlu0 %984  ;;  %1573 = vmatmul.mubr.msk.f32.gmra.mrb[2].mxu0 %vm246_vm1, %v196_v28 }
  0xa0   : > { %v990_v31 = vsel %vm988_vm5, %v985_v30, %v987_v29  ;;  %346 = vmatprep.mubr.f32.mxu1 %v1799_v0  ;;  %559 = vmatprep.mubr.f32.mxu0 %v1799_v0 }
  0xa1   : > { %v983_v34 = vpop.permute.xlu1 %982  ;;  %1596 = vmatprep.subr.msk.mxu0 %vm259_vm0, %v990_v31 }
  0xa2   : > { %v989_v35 = vsel %vm988_vm5, %v983_v34, %v985_v30 }
  0xa3   : > { %1563 = vmatmul.mubr.msk.f32.gmra.mrb[6].mxu1 %vm246_vm1, %v186_v32  ;;  %v607_v36 = vpop.permute.xlu0 %606  ;;  %1574 = vmatmul.mubr.msk.f32.gmra.mrb[4].mxu0 %vm246_vm1, %v197_v33 }
  0xa4   : > { %1597 = vmatpush1.msk.msra.mxu0 %vm259_vm0, %v989_v35  ;;  %445 = vmatprep.mubr.f32.mxu1 %v1799_v0  ;;  %v613_v39 = vsel %vm612_vm4, %v607_v36, %v609_v25 }
  0xa5   : > { %v725_v40 = vpop.permute.xlu1 %724  ;;  %565 = vmatprep.mubr.f32.mxu0 %v1799_v0 }
  0xa7   : > { %1568 = vmatmul.mubr.msk.f32.vlgmr.msra.gmra.mrb[4].mxu1 %vm246_vm1, %v173_v37  ;;  %v723_v41 = vpop.permute.xlu0 %722  ;;  %1575 = vmatmul.mubr.msk.f32.gmra.mrb[6].mxu0 %vm246_vm1, %v198_v38 }
  0xa8   : > { %1579 = vmatpush1.msk.msra.mxu1 %vm259_vm0, %v613_v39  ;;  %v728_v42 = vsel %vm726_vm6, %v723_v41, %v725_v40  ;;  %451 = vmatprep.mubr.f32.mxu1 %v1799_v0 }
  0xa9   : > { %v1101_v45 = vpop.permute.xlu1 %1100  ;;  %1071 = vmatprep.mubr.f32.mxu0 %v1799_v0  ;;  %1584 = vmatprep.subr.msk.mxu1 %vm259_vm0, %v728_v42 }
  0xab   : > { %1569 = vmatmul.mubr.msk.f32.gmra.mrb[6].mxu1 %vm246_vm1, %v174_v43  ;;  %v1099_v46 = vpop.permute.xlu0 %1098  ;;  %1598 = vmatmul.mubr.msk.f32.vlgmr.msra.gmra.mrb[8].mxu0 %vm246_vm1, %v191_v44 }
  0xac   : > { %v1104_v47 = vsel %vm1102_vm7, %v1099_v46, %v1101_v45  ;;  %695 = vmatprep.mubr.f32.mxu1 %v1799_v0  ;;  %1077 = vmatprep.mubr.f32.mxu0 %v1799_v0 }
  0xad   : > { %v1097_v50 = vpop.permute.xlu1 %1096  ;;  %1602 = vmatprep.subr.msk.mxu0 %vm259_vm0, %v1104_v47 }
  0xae   : > { %v1103_v51 = vsel %vm1102_vm7, %v1097_v50, %v1099_v46  ;;  %v207_v46 = vlaneseq }
  0xaf   : > { %1580 = vmatmul.mubr.msk.f32.vlgmr.msra.gmra.mrb[8].mxu1 %vm246_vm1, %v187_v48  ;;  %v721_v52 = vpop.permute.xlu0 %720  ;;  %1599 = vmatmul.mubr.msk.f32.gmra.mrb[10].mxu0 %vm246_vm1, %v192_v49 }
  0xb0   : > { %v727_v53 = vsel %vm726_vm6, %v721_v52, %v723_v41  ;;  %1603 = vmatpush1.msk.msra.mxu0 %vm259_vm0, %v1103_v51  ;;  %701 = vmatprep.mubr.f32.mxu1 %v1799_v0  ;;  %v208_v47 = vand.u32 127, %v207_v46 }
  0xb1   : > { %1585 = vmatpush1.msk.msra.mxu1 %vm259_vm0, %v727_v53  ;;  %1083 = vmatprep.mubr.f32.mxu0 %v1799_v0  ;;  %v839_v56 = vpop.permute.xlu1 %838 }
  0xb2   : > { %v209_v48 = vadd.s32 128, %v208_v47  ;;  %v214_v49 = vand.u32 15, %v208_v47 }
  0xb3   : > { %1581 = vmatmul.mubr.msk.f32.gmra.mrb[10].mxu1 %vm246_vm1, %v188_v54  ;;  %v837_v57 = vpop.permute.xlu0 %836  ;;  %1600 = vmatmul.mubr.msk.f32.gmra.mrb[12].mxu0 %vm246_vm1, %v193_v55 }
  0xb4   : > { %v842_v58 = vsel %vm840_vm8, %v837_v57, %v839_v56  ;;  %707 = vmatprep.mubr.f32.mxu1 %v1799_v0  ;;  %1089 = vmatprep.mubr.f32.mxu0 %v1799_v0  ;;  %v221_v50 = vand.u32 15, %v209_v48  ;;  %vm580_vm10 = vcmp.ge.s32.totalorder %v214_v49, 1  ;;  %vm1334_vm12 = vcmp.lt.s32.totalorder %v214_v49, 15 }
  0xb5   : > { %v1215_v61 = vpop.permute.xlu1 %1214  ;;  %1590 = vmatprep.subr.msk.mxu1 %vm259_vm0, %v842_v58  ;;  %v1576_v52 = vsel %vm580_vm10, 1.0, %v1799_v0  ;;  %v1614_v55 = vsel %vm1334_vm12, 1.0, %v1799_v0 }
  0xb6   : > { %vm581_vm11 = vcmp.ge.s32.totalorder %v221_v50, 1  ;;  %vm1335_vm13 = vcmp.lt.s32.totalorder %v221_v50, 15 }
  0xb7   : > { %1582 = vmatmul.mubr.msk.f32.gmra.mrb[12].mxu1 %vm246_vm1, %v189_v59  ;;  %v1213_v62 = vpop.permute.xlu0 %1212  ;;  %1601 = vmatmul.mubr.msk.f32.gmra.mrb[14].mxu0 %vm246_vm1, %v194_v60  ;;  %v1577_v54 = vsel %vm581_vm11, 1.0, %v1799_v0  ;;  %v1615_v56 = vsel %vm1335_vm13, 1.0, %v1799_v0 }
  0xb8   : > { %v1218_v63 = vsel %vm1216_vm9, %v1213_v62, %v1215_v61  ;;  %713 = vmatprep.mubr.f32.mxu1 %v1799_v0  ;;  %1185 = vmatprep.mubr.f32.mxu0 %v1799_v0 }
  0xb9   : > { %v1211_v3 = vpop.permute.xlu1 %1210  ;;  %1608 = vmatprep.subr.msk.mxu0 %vm259_vm0, %v1218_v63 }
  0xba   : > { %v1217_v4 = vsel %vm1216_vm9, %v1211_v3, %v1213_v62 }
  0xbb   : > { %1583 = vmatmul.mubr.msk.f32.gmra.mrb[14].mxu1 %vm246_vm1, %v190_v1  ;;  %v835_v5 = vpop.permute.xlu0 %834  ;;  %1604 = vmatmul.mubr.msk.f32.vlgmr.msra.gmra.mrb[8].mxu0 %vm246_vm1, %v179_v2 }
  0xbc   : > { %809 = vmatprep.mubr.f32.mxu1 %v1799_v0  ;;  %1191 = vmatprep.mubr.f32.mxu0 %v1799_v0  ;;  %v841_v8 = vsel %vm840_vm8, %v835_v5, %v837_v57 }
  0xbd   : > { %1609 = vmatpush1.msk.msra.mxu0 %vm259_vm0, %v1217_v4 }
  0xbf   : > { %1586 = vmatmul.mubr.msk.f32.vlgmr.msra.gmra.mrb[8].mxu1 %vm246_vm1, %v175_v6  ;;  %1605 = vmatmul.mubr.msk.f32.gmra.mrb[10].mxu0 %vm246_vm1, %v180_v7 }
  0xc0   : > { %1591 = vmatpush1.msk.msra.mxu1 %vm259_vm0, %v841_v8  ;;  %815 = vmatprep.mubr.f32.mxu1 %v1799_v0 }
  0xc1   : > { %1197 = vmatprep.mubr.f32.mxu0 %v1799_v0 }
  0xc3   : > { %1587 = vmatmul.mubr.msk.f32.gmra.mrb[10].mxu1 %vm246_vm1, %v176_v9  ;;  %1606 = vmatmul.mubr.msk.f32.gmra.mrb[12].mxu0 %vm246_vm1, %v181_v10 }
  0xc4   : > { %821 = vmatprep.mubr.f32.mxu1 %v1799_v0  ;;  %1203 = vmatprep.mubr.f32.mxu0 %v1799_v0 }
  0xc7   : > { %1588 = vmatmul.mubr.msk.f32.gmra.mrb[12].mxu1 %vm246_vm1, %v177_v11  ;;  %1607 = vmatmul.mubr.msk.f32.gmra.mrb[14].mxu0 %vm246_vm1, %v182_v12 }
  0xc8   : > { %827 = vmatprep.mubr.f32.mxu1 %v1799_v0  ;;  %1299 = vmatprep.mubr.f32.mxu0 %v1799_v0 }
  0xcb   : > { %1589 = vmatmul.mubr.msk.f32.gmra.mrb[14].mxu1 %vm246_vm1, %v178_v13  ;;  %1610 = vmatmul.mubr.msk.f32.vlgmr.msra.gmra.mrb[8].mxu0 %vm246_vm1, %v203_v14 }
  0xcc   : > { %923 = vmatprep.mubr.f32.mxu1 %v1799_v0  ;;  %1305 = vmatprep.mubr.f32.mxu0 %v1799_v0  ;;  %v1365_v6 = vpop.permute.xlu0 %1364 }
  0xcf   : > { %1592 = vmatmul.mubr.msk.f32.vlgmr.msra.gmra.mrb[8].mxu1 %vm246_vm1, %v199_v15  ;;  %1611 = vmatmul.mubr.msk.f32.gmra.mrb[10].mxu0 %vm246_vm1, %v204_v16 }
  0xd0   : > { %929 = vmatprep.mubr.f32.mxu1 %v1799_v0  ;;  %1311 = vmatprep.mubr.f32.mxu0 %v1799_v0 }
  0xd3   : > { %1593 = vmatmul.mubr.msk.f32.gmra.mrb[10].mxu1 %vm246_vm1, %v200_v17  ;;  %1612 = vmatmul.mubr.msk.f32.gmra.mrb[12].mxu0 %vm246_vm1, %v205_v18  ;;  %v1370_v18 = vpop.permute.xlu1 %1369 }
  0xd4   : > { %935 = vmatprep.mubr.f32.mxu1 %v1799_v0  ;;  %1317 = vmatprep.mubr.f32.mxu0 %v1799_v0 }
  0xd7   : > { %1594 = vmatmul.mubr.msk.f32.gmra.mrb[12].mxu1 %vm246_vm1, %v201_v19  ;;  %1613 = vmatmul.mubr.msk.f32.gmra.mrb[14].mxu0 %vm246_vm1, %v206_v20  ;;  %v1375_v46 = vpop.permute.xlu1 %1374 }
  0xd8   : > { %941 = vmatprep.mubr.f32.mxu1 %v1799_v0 }
  0xdb   : > { %1595 = vmatmul.mubr.msk.f32.gmra.mrb[14].mxu1 %vm246_vm1, %v202_v21 }
 0x16a   : > { %v330_v22 = vpop.f32.mrb[0].mxu1 }
 0x16b   : > { %v332_v23 = vpop.f32.mrb[1].mxu1 }
 0x16e   : > { %v549_v24 = vpop.f32.mrb[0].mxu0  ;;  %v336_v25 = vpop.f32.mrb[2].mxu1 }
 0x16f   : > { %v1624_v26 = vadd.f32 %v549_v24, %v330_v22  ;;  %v551_v27 = vpop.f32.mrb[1].mxu0  ;;  %v338_v28 = vpop.f32.mrb[3].mxu1 }
 0x170   : > { %v1625_v29 = vadd.f32 %v551_v27, %v332_v23 }
 0x171   : > { %v590_v57 = vmul.f32 %v1624_v26, %v1576_v52 }
 0x172   : > { %v555_v30 = vpop.f32.mrb[2].mxu0  ;;  %v591_v60 = vmul.f32 %v1625_v29, %v1577_v54 }
 0x173   : > { %v1626_v31 = vadd.f32 %v555_v30, %v336_v25  ;;  %v557_v32 = vpop.f32.mrb[3].mxu0 }
 0x174   : > { %v1627_v33 = vadd.f32 %v557_v32, %v338_v28 }
 0x175   : > { %v592_v5 = vmul.f32 %v1626_v31, %v1576_v52 }
 0x176   : > { %v561_v34 = vpop.f32.mrb[4].mxu0  ;;  %v593_v10 = vmul.f32 %v1627_v33, %v1577_v54 }
 0x177   : > { %v563_v35 = vpop.f32.mrb[5].mxu0 }
 0x17a   : > { %v447_v36 = vpop.f32.mrb[4].mxu1  ;;  %v567_v37 = vpop.f32.mrb[6].mxu0 }
 0x17b   : > { %v1628_v38 = vadd.f32 %v561_v34, %v447_v36  ;;  %v449_v39 = vpop.f32.mrb[5].mxu1  ;;  %v569_v40 = vpop.f32.mrb[7].mxu0 }
 0x17c   : > { %v1629_v41 = vadd.f32 %v563_v35, %v449_v39 }
 0x17d   : > { %v594_v21 = vmul.f32 %v1628_v38, %v1576_v52 }
 0x17e   : > { %v453_v42 = vpop.f32.mrb[6].mxu1  ;;  %v595_v27 = vmul.f32 %v1629_v41, %v1577_v54 }
 0x17f   : > { %v2129_v43 = vadd.f32 %v567_v37, %v453_v42  ;;  %v455_v44 = vpop.f32.mrb[7].mxu1 }
 0x180   : > { %v2131_v45 = vadd.f32 %v569_v40, %v455_v44 }
 0x181   : > { %v596_v40 = vmul.f32 %v2129_v43, %v1576_v52 }
 0x182   : > { %v597_v48 = vmul.f32 %v2131_v45, %v1577_v54 }
 0x19e   : > { %v1301_v51 = vpop.f32.mrb[8].mxu0 }
 0x19f   : > { %v1303_v53 = vpop.f32.mrb[9].mxu0  ;;  %v1342_v61 = vmul.f32 %v1614_v55, %v1301_v51 }
 0x1a0   : > { %v1343_v2 = vmul.f32 %v1615_v56, %v1303_v53 }
 0x1a2   : > { %v925_v58 = vpop.f32.mrb[8].mxu1  ;;  %v1307_v59 = vpop.f32.mrb[10].mxu0 }
 0x1a3   : > { %v974_v62 = vadd.f32 %v925_v58, %v590_v57  ;;  %v927_v63 = vpop.f32.mrb[9].mxu1  ;;  %v1309_v1 = vpop.f32.mrb[11].mxu0  ;;  %v1344_v11 = vmul.f32 %v1614_v55, %v1307_v59 }
 0x1a4   : > { %v975_v3 = vadd.f32 %v927_v63, %v591_v60  ;;  %v1345_v15 = vmul.f32 %v1615_v56, %v1309_v1 }
 0x1a5   : > { %v1350_v4 = vadd.f32 %v1342_v61, %v974_v62  ;;  %v1380_v62 = vpop.permute.xlu0 %1379 }
 0x1a6   : > { %v1351_v7 = vadd.f32 %v1343_v2, %v975_v3  ;;  %v931_v8 = vpop.f32.mrb[10].mxu1  ;;  %v1313_v9 = vpop.f32.mrb[12].mxu0 }
 0x1a7   : > { %v976_v12 = vadd.f32 %v931_v8, %v592_v5  ;;  %v2137_v0 = vadd.f32 %v1365_v6, %v1350_v4  ;;  %v933_v13 = vpop.f32.mrb[11].mxu1  ;;  %v1315_v14 = vpop.f32.mrb[13].mxu0  ;;  %v1346_v28 = vmul.f32 %v1614_v55, %v1313_v9 }
 0x1a8   : > { %v2139_v16 = vadd.f32 %v1365_v6, %v1351_v7  ;;  %v977_v17 = vadd.f32 %v933_v13, %v593_v10  ;;  %v1347_v34 = vmul.f32 %v1615_v56, %v1315_v14 }
 0x1a9   : > { %v1352_v19 = vadd.f32 %v1344_v11, %v976_v12  ;;  %v1406_v20 = vmul.f32 %v2137_v0, %v2137_v0 }
 0x1aa   : > { %v1390_v22 = vadd.f32 %v2139_v16, %v2137_v0  ;;  %v1407_v23 = vmul.f32 %v2139_v16, %v2139_v16  ;;  %v1353_v24 = vadd.f32 %v1345_v15, %v977_v17  ;;  %v937_v25 = vpop.f32.mrb[12].mxu1  ;;  %v1319_v26 = vpop.f32.mrb[14].mxu0 }
 0x1ab   : > { %v2147_v29 = vadd.f32 %v1370_v18, %v1352_v19  ;;  %v978_v30 = vadd.f32 %v937_v25, %v594_v21  ;;  %v939_v31 = vpop.f32.mrb[13].mxu1  ;;  %v1321_v32 = vpop.f32.mrb[15].mxu0  ;;  %v1348_v42 = vmul.f32 %v1614_v55, %v1319_v26 }
 0x1ac   : > { %v1414_v33 = vadd.f32 %v1407_v23, %v1406_v20  ;;  %v2149_v35 = vadd.f32 %v1370_v18, %v1353_v24  ;;  %v979_v36 = vadd.f32 %v939_v31, %v595_v27  ;;  %v1349_v58 = vmul.f32 %v1615_v56, %v1321_v32 }
 0x1ad   : > { %v1391_v37 = vadd.f32 %v1390_v22, %v2147_v29  ;;  %v1408_v38 = vmul.f32 %v2147_v29, %v2147_v29  ;;  %v1354_v39 = vadd.f32 %v1346_v28, %v978_v30 }
 0x1ae   : > { %v1409_v41 = vmul.f32 %v2149_v35, %v2149_v35  ;;  %v1355_v44 = vadd.f32 %v1347_v34, %v979_v36  ;;  %v943_v47 = vpop.f32.mrb[14].mxu1 }
 0x1af   : > { %v1392_v49 = vadd.f32 %v1391_v37, %v2149_v35  ;;  %v1415_v50 = vadd.f32 %v1414_v33, %v1408_v38  ;;  %v2159_v51 = vadd.f32 %v1375_v46, %v1354_v39  ;;  %v980_v53 = vadd.f32 %v943_v47, %v596_v40  ;;  %v945_v57 = vpop.f32.mrb[15].mxu1 }
 0x1b0   : > { %v2161_v59 = vadd.f32 %v1375_v46, %v1355_v44  ;;  %v981_v43 = vadd.f32 %v945_v57, %v597_v48 }
 0x1b1   : > { %v1416_v52 = vadd.f32 %v1415_v50, %v1409_v41  ;;  %v1393_v60 = vadd.f32 %v1392_v49, %v2159_v51  ;;  %v1410_v55 = vmul.f32 %v2159_v51, %v2159_v51  ;;  %v1356_v61 = vadd.f32 %v1348_v42, %v980_v53 }
 0x1b2   : > { %v1411_v45 = vmul.f32 %v2161_v59, %v2161_v59  ;;  %v1357_v54 = vadd.f32 %v1349_v58, %v981_v43 }
 0x1b3   : > { %v2168_v63 = vadd.f32 %v1380_v62, %v1356_v61  ;;  %v1394_v1 = vadd.f32 %v1393_v60, %v2161_v59  ;;  %v1417_v56 = vadd.f32 %v1416_v52, %v1410_v55 }
 0x1b4   : > { %v1389_v2 = vadd.f32 %v1380_v62, %v1357_v54 }
 0x1b5   : > { %v1395_v3 = vadd.f32 %v1394_v1, %v2168_v63  ;;  %v1412_v4 = vmul.f32 %v2168_v63, %v2168_v63  ;;  %v1418_v5 = vadd.f32 %v1417_v56, %v1411_v45 }
 0x1b6   : > { %v1413_v6 = vmul.f32 %v1389_v2, %v1389_v2 }
 0x1b7   : > { %v1396_v7 = vadd.f32 %v1395_v3, %v1389_v2  ;;  %v1419_v8 = vadd.f32 %v1418_v5, %v1412_v4 }
 0x1b9   : > { %1397 = vadd.xlane.f32.xlu1 %v1396_v7  ;;  %v1420_v9 = vadd.f32 %v1419_v8, %v1413_v6 }
 0x1bb   : > { %1421 = vadd.xlane.f32.xlu0 %v1420_v9 }
 0x246   : > { %v1398_v10 = vpop.xlane.xlu1 %1397 }
 0x247   : > { %v1399_v11 = vrot.slane %v1398_v10, 4 }
 0x248   : > { %v1422_v12 = vpop.xlane.xlu0 %1421 }
 0x249   : > { %v1400_v13 = vadd.f32 %v1399_v11, %v1398_v10  ;;  %v1423_v14 = vrot.slane %v1422_v12, 4 }
 0x24b   : > { %v1401_v15 = vrot.slane %v1400_v13, 2  ;;  %v1424_v17 = vadd.f32 %v1423_v14, %v1422_v12 }
 0x24d   : > { %v1425_v18 = vrot.slane %v1424_v17, 2  ;;  %v1402_v19 = vadd.f32 %v1401_v15, %v1400_v13 }
 0x24f   : > { %v1426_v20 = vadd.f32 %v1425_v18, %v1424_v17  ;;  %v1403_v21 = vrot.slane %v1402_v19, 1 }
 0x251   : > { %v1404_v22 = vadd.f32 %v1403_v21, %v1402_v19  ;;  %v1427_v23 = vrot.slane %v1426_v20, 1 }
 0x253   : > { %1673 = vpush %v1404_v22  ;;  %v1428_v24 = vadd.f32 %v1427_v23, %v1426_v20 }
 0x255   : > { %1675 = vpush %v1428_v24 }
 0x284   : > { %s1674_s27 = spop %1673 }
 0x285   : > { %s1432_s28 = smul.f32 0.00012207031, %s1674_s27  ;;  %s1739_s27 = sshll.u32 %s1809_s26, 4  ;;  %s1740_s27 = int_to_ptr.vmem [resolvable:$false] %s1739_s27 }
 0x286   : > { %s1676_s29 = spop %1675  ;;  %p1742_p0 = scmp.lt.s32.totalorder %s2190_s17, %s1740_s27 }
 0x287   : > { %s1436_s30 = smul.f32 %s1432_s28, %s1432_s28  ;;  %v1442_v27 = vstv %s1432_s28  ;;  %s1741_s28 = scalar_lea.vmem %s1740_s27, 2048 }
 0x288   : > { %s1435_s4 = smul.f32 0.00012207031, %s1676_s29  ;;  %v1443_v28 = vsub.f32 %v2137_v0, %v1442_v27  ;;  %v1444_v30 = vsub.f32 %v2139_v16, %v1442_v27  ;;  %v1445_v31 = vsub.f32 %v2147_v29, %v1442_v27  ;;  %v1446_v32 = vsub.f32 %v2149_v35, %v1442_v27  ;;  %p1743_p1 = scmp.lt.s32.totalorder %s1741_s28, %s1735_s25 }
 0x289   : > { %v1447_v33 = vsub.f32 %v2159_v51, %v1442_v27  ;;  %v1448_v34 = vsub.f32 %v2161_v59, %v1442_v27  ;;  %v1449_v36 = vsub.f32 %v2168_v63, %v1442_v27  ;;  %v1450_v37 = vsub.f32 %v1389_v2, %v1442_v27 }
 0x28a   : > { %s1437_s5 = ssub.f32 %s1435_s4, %s1436_s30  ;;  %p1744_p2 = por %p1743_p1, %p1742_p0 }
 0x28c   : > { %s1438_s6 = sadd.f32 1e-05, %s1437_s5  ;;  %p1745_p3 = pnand %p1744_p2, %p1738_p13 }
 0x28e   : > { %v1439_v25 = vstv %s1438_s6 }
 0x28f   : > { %1733 = vrsqrt.f32 %v1439_v25 }
 0x299   : > { %v1734_v26 = vpop.eup %1733 }
 0x29a   : > { %1677 = vpush %v1734_v26 }
 0x2cb   : > { %s1678_s9 = spop %1677 }
 0x2cc   : > { %v1451_v38 = vstv %s1678_s9 }
 0x2cd   : > { %v1452_v39 = vmul.f32 %v1451_v38, %v1443_v28  ;;  %v1453_v0 = vmul.f32 %v1451_v38, %v1444_v30  ;;  %v1454_v40 = vmul.f32 %v1451_v38, %v1445_v31  ;;  %v1455_v41 = vmul.f32 %v1451_v38, %v1446_v32 }
 0x2ce   : > { %v1456_v16 = vmul.f32 %v1451_v38, %v1447_v33  ;;  %v1457_v42 = vmul.f32 %v1451_v38, %v1448_v34  ;;  %v1458_v29 = vmul.f32 %v1451_v38, %v1449_v36  ;;  %v1459_v44 = vmul.f32 %v1451_v38, %v1450_v37 }
 0x2cf   : > { %v1460_v35 = vmax.f32 %v1452_v39, 0.0  ;;  %v1461_v46 = vmax.f32 %v1453_v0, 0.0  ;;  %v1462_v47 = vmax.f32 %v1454_v40, 0.0  ;;  %v1463_v48 = vmax.f32 %v1455_v41, 0.0 }
 0x2d0   : > { %v1464_v49 = vmax.f32 %v1456_v16, 0.0  ;;  %v1465_v50 = vmax.f32 %v1457_v42, 0.0  ;;  %v1466_v51 = vmax.f32 %v1458_v29, 0.0  ;;  %v1467_v53 = vmax.f32 %v1459_v44, 0.0 }
 0x2d1   : > { %1468 = vst [vmem:[%s163_s11] sm:$0xff] %v1460_v35  ;;  %1469 = vst [vmem:[%s163_s11 + $0x8] sm:$0xff] %v1461_v46 }
 0x2d2   : > { %1470 = vst [vmem:[%s163_s11 + $0x10] sm:$0xff] %v1462_v47  ;;  %1471 = vst [vmem:[%s163_s11 + $0x18] sm:$0xff] %v1463_v48 }
 0x2d3   : > { %1472 = vst [vmem:[%s163_s11 + $0x20] sm:$0xff] %v1464_v49  ;;  %1473 = vst [vmem:[%s163_s11 + $0x28] sm:$0xff] %v1465_v50 }
 0x2d4   : > { %1474 = vst [vmem:[%s163_s11 + $0x30] sm:$0xff] %v1466_v51  ;;  %1475 = vst [vmem:[%s163_s11 + $0x38] sm:$0xff] %v1467_v53 }
 0x2d5   : > { %1748 = shalt.err (!%p1745_p3)
}
 0x2d6   : > { %s1749_s29 = scalar_lea.hbm %s2188_s24, 1024  ;;  %s1753_s5 = scalar_lea.hbm %s2238_s3, 2048 }
 0x2d7   : > { %p1750_p4 = scmp.ne.s32.totalorder %s2188_s24, %s1749_s29  ;;  %p1754_p9 = scmp.lt.u32.totalorder %s2188_s24, %s2238_s3 }
 0x2d8   : > { %p1755_p10 = scmp.lt.u32.totalorder %s1753_s5, %s1749_s29  ;;  %p1757_p12 = scmp.lt.u32.totalorder %s1749_s29, %s2188_s24 }
 0x2d9   : > { %p1751_p7 = pnand %p1750_p4, %p1870_p5 }
 0x2da   : > { %p1756_p11 = por %p1755_p10, %p1754_p9 }
 0x2db   : > { %p1752_p8 = pneg %p1751_p7 }
 0x2dc   : > { %p1758_p13 = por %p1757_p12, %p1756_p11 }
 0x2de   : > { %p1759_p0 = pnand %p1758_p13, %p1752_p8 }
 0x2e0   : > { %1762 = shalt.err (!%p1759_p0)
}
 0x2e1   : > { %s1810_s8 = smov 256   ;;  %s1811_s9 = smov 16  }
 0x2e2   : > { %1679 = dma.vmem_to_hbm [thread:$0]  (%p1870_p5), %s2190_s17, 1024, %s2188_s24, %s2194_s16, %s1810_s8, %s1810_s8, %s1811_s9  }
 0x2e3 PF: > { %p1685_p1 = scmp.ge.s32.totalorder %s1797_s15, 2  ;;  %s1505_s10 = sand.u32 1, %s1785_s12  }
 0x2e4   : > { %s1506_s11 = scalar_lea.sflag [#allocation3], %s1505_s10 }
 0x2e5   : > { %p1682_p2 = pnand %p1685_p1, %p1874_p6 }
 0x2e7   : > { %1780 = dma.done.wait (!%p1682_p2), %s1506_s11, 1024  }
 0x2e8   : > { %1782 = vsyncadd (!%p1682_p2), %s1506_s11, 4294966272  ;;  %p13_p3 = scmp.ge.s32.totalorder %s1857_s18, 4   ;;  %s2241_s12 = smov %s1789_s13 }
 0x2e9   : > { %s2242_s13 = smov %s1793_s14  ;;  %s2243_s14 = smov %s1868_s21 }
 0x2ea   : > { %s2244_s15 = smov %s1857_s18  ;;  %15 = sbr.rel (!%p13_p3) target bundleno = 3 (0x3), region = 67 }
 0x2f1   :  { %1511 = vsyncpa [#allocation3], 1 }
 0x2f2   :  { %1513 = vsyncpa [#allocation3 + $0x1], 1 }

</bundles_post_ra>
